<compile_context>
chip_gen: v5e
topology: v5e:2x2
jax: 0.10.0
libtpu: 0.0.40
codegen_flags: <defaults>
</compile_context>

<pallas_src>
import jax
import jax.numpy as jnp
from jax import lax
from jax.experimental import pallas as pl
from jax.experimental.pallas import tpu as pltpu

BIG = 9999999.0


def soft_triplet_kernel(e1_ref, e2_ref, lab_col_ref, lab_row_ref,
                        sq1_col_ref, sq1_row_ref, sq2_col_ref,
                        valid_row_ref, out_ref):
    tm = out_ref.shape[0]
    n = e1_ref.shape[0]
    row0 = pl.multiple_of(pl.program_id(0) * tm, tm)

    # ---- emb1 pairwise squared distances for this row block (MXU Gram) ----
    e1b = e1_ref[pl.ds(row0, tm), :]                                        # (TM, D)
    gram1 = lax.dot_general(e1b, e1_ref[...], (((1,), (1,)), ((), ())),
                            preferred_element_type=jnp.float32)             # (TM, N)
    d1sq = jnp.maximum(sq1_col_ref[...] + sq1_row_ref[...] - 2.0 * gram1, 1e-12)

    # ---- hardest positive / negative on squared distances (sqrt is monotone) ----
    sim = lab_col_ref[...] == lab_row_ref[...]                               # (TM, N) bool
    valid = valid_row_ref[...] > 0                                           # (1, N)  bool
    iota = lax.broadcasted_iota(jnp.int32, (tm, n), 1)

    pos_mask = jnp.logical_and(sim, valid)
    # negatives = valid AND not positive  (pos_mask is a subset of valid -> XOR)
    neg_mask = jnp.logical_xor(valid, pos_mask)

    masked_p = jnp.where(pos_mask, d1sq, -BIG)
    hard_p_sq = jnp.max(masked_p, axis=1, keepdims=True)                     # (TM, 1)
    ap_idx = jnp.min(jnp.where(masked_p == hard_p_sq, iota, n),
                     axis=1, keepdims=True)                                  # (TM, 1) int32

    # TODO(synk): rows with no negative sample saturate hard_n at sqrt(BIG) and collapse
    # an_idx to column 0 (the PyTorch code's +9999999 saturation behaves differently there).
    masked_n = jnp.where(neg_mask, d1sq, BIG)
    hard_n_sq = jnp.min(masked_n, axis=1, keepdims=True)
    an_idx = jnp.min(jnp.where(masked_n == hard_n_sq, iota, n),
                     axis=1, keepdims=True)

    hard_p = jnp.sqrt(jnp.maximum(hard_p_sq, 0.0))                           # sqrt only on
    hard_n = jnp.sqrt(hard_n_sq)                                             # gathered values

    # ---- emb2 reference distances via one-hot MXU row gathers (no full d2 matrix) ----
    e2_all = e2_ref[...]
    onehot_ap = (iota == ap_idx).astype(e2_all.dtype)                        # exact 0/1
    onehot_an = (iota == an_idx).astype(e2_all.dtype)
    e2_ap = lax.dot_general(onehot_ap, e2_all, (((1,), (0,)), ((), ())),
                            preferred_element_type=jnp.float32)              # (TM, D)
    e2_an = lax.dot_general(onehot_an, e2_all, (((1,), (0,)), ((), ())),
                            preferred_element_type=jnp.float32)
    e2b = e2_ref[pl.ds(row0, tm), :].astype(jnp.float32)                     # (TM, D)

    sq2_blk = sq2_col_ref[...]                                               # (TM, 1)
    sq2_ap = jnp.sum(e2_ap * e2_ap, axis=1, keepdims=True)
    sq2_an = jnp.sum(e2_an * e2_an, axis=1, keepdims=True)
    dot_ap = jnp.sum(e2b * e2_ap, axis=1, keepdims=True)
    dot_an = jnp.sum(e2b * e2_an, axis=1, keepdims=True)
    ap_ref = jnp.sqrt(jnp.maximum(sq2_blk + sq2_ap - 2.0 * dot_ap, 1e-12))
    an_ref = jnp.sqrt(jnp.maximum(sq2_blk + sq2_an - 2.0 * dot_an, 1e-12))

    # ---- log_softmax over the hard pair; softmax over the reference pair (all (TM,1)) ----
    m = jnp.maximum(hard_p, hard_n)
    lse = m + jnp.log(jnp.exp(hard_p - m) + jnp.exp(hard_n - m))
    lsm_ap = hard_p - lse
    lsm_an = hard_n - lse

    mref = jnp.maximum(ap_ref, an_ref)
    ea = jnp.exp(ap_ref - mref)
    eb = jnp.exp(an_ref - mref)
    denom = ea + eb
    ra = ea / denom
    rb = eb / denom

    # per-row loss (columns already summed); mean over rows is applied in the wrapper
    out_ref[...] = -(ra * lsm_ap + rb * lsm_an)


def _vmem_capacity():
    try:
        return int(pltpu.get_tpu_info().vmem_capacity_bytes)
    except Exception:
        return 64 * 1024 * 1024  # conservative (v7x) fallback


def _choose_tiling(n, d, itemsize):
    """Pick (TM, N_pad), VMEM-budget aware (accounts for the (TM,N) temporaries)."""
    cap = _vmem_capacity()
    budget = int(cap * 0.55)
    n8 = ((n + 7) // 8) * 8
    resident = 2 * n8 * d * itemsize + 16 * n8 * 4        # single-buffered e1/e2 + row vecs
    per_row = 8 * 4 * n8 + 6 * 4 * d                      # ~8 live (TM,N) f32 temps + (TM,D)
    avail = max(budget - resident, 8 * per_row)
    tm = 512
    while tm > 8 and tm * per_row > avail:
        tm //= 2
    if n8 <= tm:
        if n8 >= 256:
            # keep >= 2 row blocks so the grid can shard across TensorCores (v7x megacore)
            tm = ((n8 // 2 + 7) // 8) * 8
        else:
            tm = n8
    n_pad = ((n + tm - 1) // tm) * tm
    return tm, n_pad


def soft_triplet_loss(emb1, emb2, label):
    # TODO(synk): margin-is-not-None / normalize_feature=True / skip_mean=True branches of
    # the module are not implemented (defaults margin=None, False, False are reproduced).
    # TODO(synk): very large N*D where both embeddings cannot stay resident in VMEM would
    # need a second (column-streaming) pipeline level; not required for typical batches.
    n, d = emb1.shape
    itemsize = jnp.dtype(emb1.dtype).itemsize
    tm, n_pad = _choose_tiling(n, d, itemsize)
    n_blocks = n_pad // tm

    label = label.astype(jnp.int32)
    pad = n_pad - n
    if pad:
        emb1 = jnp.pad(emb1, ((0, pad), (0, 0)))
        emb2 = jnp.pad(emb2, ((0, pad), (0, 0)))
        label = jnp.pad(label, (0, pad), constant_values=-1)

    lab_col = label.reshape(n_pad, 1)
    lab_row = label.reshape(1, n_pad)
    e1f = emb1.astype(jnp.float32)
    e2f = emb2.astype(jnp.float32)
    sq1 = jnp.sum(e1f * e1f, axis=1)
    sq2 = jnp.sum(e2f * e2f, axis=1)
    sq1_col = sq1.reshape(n_pad, 1)
    sq1_row = sq1.reshape(1, n_pad)
    sq2_col = sq2.reshape(n_pad, 1)
    valid_row = (jnp.arange(n_pad) < n).astype(jnp.int32).reshape(1, n_pad)

    # VMEM working set: single-buffered residents + (TM,N) temporaries + small blocks.
    work = (2 * n_pad * d * itemsize
            + 8 * tm * n_pad * 4
            + 6 * tm * d * 4
            + 16 * n_pad * 4
            + 16 * tm * 4)
    cap = _vmem_capacity()
    vmem_limit = min(int(cap * 0.85), max(32 * 1024 * 1024, int(work * 1.4)))

    per_row = pl.pallas_call(
        soft_triplet_kernel,
        grid=(n_blocks,),
        out_shape=jax.ShapeDtypeStruct((n_pad, 1), jnp.float32),
        in_specs=[
            pl.BlockSpec((n_pad, d), lambda i: (0, 0),
                         pipeline_mode=pl.Buffered(1)),    # emb1 resident (single-buffered)
            pl.BlockSpec((n_pad, d), lambda i: (0, 0),
                         pipeline_mode=pl.Buffered(1)),    # emb2 resident (single-buffered)
            pl.BlockSpec((tm, 1), lambda i: (i, 0)),       # labels (column block)
            pl.BlockSpec((1, n_pad), lambda i: (0, 0),
                         pipeline_mode=pl.Buffered(1)),    # labels (row form)
            pl.BlockSpec((tm, 1), lambda i: (i, 0)),       # |emb1|^2 column block
            pl.BlockSpec((1, n_pad), lambda i: (0, 0),
                         pipeline_mode=pl.Buffered(1)),    # |emb1|^2 row
            pl.BlockSpec((tm, 1), lambda i: (i, 0)),       # |emb2|^2 column block
            pl.BlockSpec((1, n_pad), lambda i: (0, 0),
                         pipeline_mode=pl.Buffered(1)),    # valid-column mask
        ],
        out_specs=pl.BlockSpec((tm, 1), lambda i: (i, 0)),
        compiler_params=pltpu.CompilerParams(
            dimension_semantics=("parallel",),
            vmem_limit_bytes=vmem_limit,
        ),
    )(emb1, emb2, lab_col, lab_row, sq1_col, sq1_row, sq2_col, valid_row)

    # loss.mean(0).sum() == sum of per-row (already column-summed) losses / N
    return jnp.sum(per_row[:n, 0]) / n


def soft_triplet_loss_ref(emb1, emb2, label):
    """Pure-JAX reference mirroring the PyTorch code."""
    n = emb1.shape[0]

    def dist(e):
        e = e.astype(jnp.float32)
        sq = jnp.sum(e * e, axis=1, keepdims=True)
        gram = jnp.matmul(e, e.T, precision=lax.Precision.HIGHEST)
        d2 = sq + sq.T - 2.0 * gram
        return jnp.sqrt(jnp.maximum(d2, 1e-12))

    d1 = dist(emb1)
    d2m = dist(emb2)
    sim = (label[:, None] == label[None, :]).astype(jnp.float32)

    masked_p = d1 - BIG * (1.0 - sim)
    hard_p = jnp.max(masked_p, axis=1)
    ap_idx = jnp.argmax(masked_p, axis=1)
    masked_n = d1 + BIG * sim
    hard_n = jnp.min(masked_n, axis=1)
    an_idx = jnp.argmin(masked_n, axis=1)

    triple = jnp.stack([hard_p, hard_n], axis=1)
    lsm = jax.nn.log_softmax(triple, axis=1)

    ap_ref = d2m[jnp.arange(n), ap_idx]
    an_ref = d2m[jnp.arange(n), an_idx]
    refsm = jax.nn.softmax(jnp.stack([ap_ref, an_ref], axis=1), axis=1)

    loss = -refsm * lsm
    return loss.mean(0).sum()


if __name__ == "__main__":
    key = jax.random.PRNGKey(0)

    # Case 1: 4 identities x 2 samples (no padding path).
    N, D = 8, 32
    k1, k2, k3, k4 = jax.random.split(key, 4)
    emb1 = jax.random.normal(k1, (N, D), dtype=jnp.float32)
    emb2 = jax.random.normal(k2, (N, D), dtype=jnp.float32)
    label = jnp.array([0, 0, 1, 1, 2, 2, 3, 3], dtype=jnp.int32)
    out = jax.block_until_ready(soft_triplet_loss(emb1, emb2, label))
    ref = soft_triplet_loss_ref(emb1, emb2, label)
    assert jnp.allclose(out, ref, atol=1e-4, rtol=1e-4), (out, ref)

    # Case 2: irregular N=12 (exercises row/column padding + validity mask).
    N2, D2 = 12, 32
    emb1b = jax.random.normal(k3, (N2, D2), dtype=jnp.float32)
    emb2b = jax.random.normal(k4, (N2, D2), dtype=jnp.float32)
    label2 = jnp.array([0, 0, 0, 1, 1, 1, 2, 2, 2, 3, 3, 3], dtype=jnp.int32)
    out2 = jax.block_until_ready(soft_triplet_loss(emb1b, emb2b, label2))
    ref2 = soft_triplet_loss_ref(emb1b, emb2b, label2)
    assert jnp.allclose(out2, ref2, atol=1e-4, rtol=1e-4), (out2, ref2)

    print("KERNEL_OK")
</pallas_src>

<mosaic_0001>
module attributes {stable_mosaic.version = 11 : i64} {
  func.func @soft_triplet_kernel(%arg0: i32, %arg1: memref<8x32xf32, #tpu.memory_space<vmem>>, %arg2: memref<8x32xf32, #tpu.memory_space<vmem>>, %arg3: memref<8x1xi32, #tpu.memory_space<vmem>>, %arg4: memref<1x8xi32, #tpu.memory_space<vmem>>, %arg5: memref<8x1xf32, #tpu.memory_space<vmem>>, %arg6: memref<1x8xf32, #tpu.memory_space<vmem>>, %arg7: memref<8x1xf32, #tpu.memory_space<vmem>>, %arg8: memref<1x8xi32, #tpu.memory_space<vmem>>, %arg9: memref<8x1xf32, #tpu.memory_space<vmem>>) attributes {dimension_semantics = [#tpu.dimension_semantics<parallel>], iteration_bounds = array<i64: 1>, scalar_prefetch = 0 : i64, scratch_operands = 0 : i64, tpu.core_type = #tpu.core_type<tc>, window_params = [{pipeline_mode = #tpu.pipeline_mode<synchronous>, transform_indices = @transform_0, window_bounds = array<i64: 8, 32>}, {pipeline_mode = #tpu.pipeline_mode<synchronous>, transform_indices = @transform_1, window_bounds = array<i64: 8, 32>}, {transform_indices = @transform_2, window_bounds = array<i64: 8, 1>}, {pipeline_mode = #tpu.pipeline_mode<synchronous>, transform_indices = @transform_3, window_bounds = array<i64: 1, 8>}, {transform_indices = @transform_4, window_bounds = array<i64: 8, 1>}, {pipeline_mode = #tpu.pipeline_mode<synchronous>, transform_indices = @transform_5, window_bounds = array<i64: 1, 8>}, {transform_indices = @transform_6, window_bounds = array<i64: 8, 1>}, {pipeline_mode = #tpu.pipeline_mode<synchronous>, transform_indices = @transform_7, window_bounds = array<i64: 1, 8>}, {transform_indices = @transform_8, window_bounds = array<i64: 8, 1>}]} {
    %c8_i32 = arith.constant 8 : i32
    %0 = arith.muli %arg0, %c8_i32 : i32
    %1 = tpu.assume_multiple %0, 8 : i32
    %2 = arith.index_cast %1 : i32 to index
    %c0 = arith.constant 0 : index
    %3 = vector.load %arg1[%2, %c0] : memref<8x32xf32, #tpu.memory_space<vmem>>, vector<8x32xf32>
    %c0_0 = arith.constant 0 : index
    %c0_1 = arith.constant 0 : index
    %4 = vector.load %arg1[%c0_0, %c0_1] : memref<8x32xf32, #tpu.memory_space<vmem>>, vector<8x32xf32>
    %cst = arith.constant dense<0.000000e+00> : vector<8x8xf32>
    %5 = tpu.matmul %3, %4, %cst {dimension_numbers = #tpu.dot_dimension_numbers<[1], [1], [0], [0], [0, 0, 1, 0], [], []>} : vector<8x32xf32>, vector<8x32xf32>, vector<8x8xf32> -> vector<8x8xf32>
    %c0_2 = arith.constant 0 : index
    %c0_3 = arith.constant 0 : index
    %6 = vector.load %arg5[%c0_2, %c0_3] : memref<8x1xf32, #tpu.memory_space<vmem>>, vector<8x1xf32>
    %c0_4 = arith.constant 0 : index
    %c0_5 = arith.constant 0 : index
    %7 = vector.load %arg6[%c0_4, %c0_5] : memref<1x8xf32, #tpu.memory_space<vmem>>, vector<1x8xf32>
    %8 = vector.broadcast %6 : vector<8x1xf32> to vector<8x8xf32>
    %9 = vector.broadcast %7 : vector<1x8xf32> to vector<8x8xf32>
    %10 = arith.addf %8, %9 : vector<8x8xf32>
    %cst_6 = arith.constant 2.000000e+00 : f32
    %11 = vector.broadcast %cst_6 : f32 to vector<8x8xf32>
    %12 = arith.mulf %11, %5 : vector<8x8xf32>
    %13 = arith.subf %10, %12 : vector<8x8xf32>
    %cst_7 = arith.constant 9.99999996E-13 : f32
    %14 = vector.broadcast %cst_7 : f32 to vector<8x8xf32>
    %15 = arith.maximumf %13, %14 : vector<8x8xf32>
    %c0_8 = arith.constant 0 : index
    %c0_9 = arith.constant 0 : index
    %16 = vector.load %arg3[%c0_8, %c0_9] : memref<8x1xi32, #tpu.memory_space<vmem>>, vector<8x1xi32>
    %c0_10 = arith.constant 0 : index
    %c0_11 = arith.constant 0 : index
    %17 = vector.load %arg4[%c0_10, %c0_11] : memref<1x8xi32, #tpu.memory_space<vmem>>, vector<1x8xi32>
    %18 = vector.broadcast %16 : vector<8x1xi32> to vector<8x8xi32>
    %19 = vector.broadcast %17 : vector<1x8xi32> to vector<8x8xi32>
    %20 = arith.cmpi eq, %18, %19 : vector<8x8xi32>
    %c0_12 = arith.constant 0 : index
    %c0_13 = arith.constant 0 : index
    %21 = vector.load %arg8[%c0_12, %c0_13] : memref<1x8xi32, #tpu.memory_space<vmem>>, vector<1x8xi32>
    %c0_i32 = arith.constant 0 : i32
    %22 = vector.broadcast %c0_i32 : i32 to vector<1x8xi32>
    %23 = arith.cmpi sgt, %21, %22 : vector<1x8xi32>
    %24 = tpu.iota {dimensions = array<i32: 1>} : vector<8x8xi32>
    %25 = vector.broadcast %23 : vector<1x8xi1> to vector<8x8xi1>
    %26 = arith.andi %20, %25 : vector<8x8xi1>
    %27 = vector.broadcast %23 : vector<1x8xi1> to vector<8x8xi1>
    %28 = arith.xori %27, %26 : vector<8x8xi1>
    %cst_14 = arith.constant 0xCB18967F : f32
    %29 = vector.broadcast %cst_14 : f32 to vector<8x8xf32>
    %30 = arith.select %26, %15, %29 : vector<8x8xi1>, vector<8x8xf32>
    %cst_15 = arith.constant dense<0xFF800000> : vector<8xf32>
    %31 = vector.multi_reduction <maximumf>, %30, %cst_15 [1] : vector<8x8xf32> to vector<8xf32>
    %32 = vector.shape_cast %31 : vector<8xf32> to vector<8x1xf32>
    %33 = vector.broadcast %32 : vector<8x1xf32> to vector<8x8xf32>
    %34 = arith.cmpf oeq, %30, %33 : vector<8x8xf32>
    %c8_i32_16 = arith.constant 8 : i32
    %35 = vector.broadcast %c8_i32_16 : i32 to vector<8x8xi32>
    %36 = arith.select %34, %24, %35 : vector<8x8xi1>, vector<8x8xi32>
    %cst_17 = arith.constant dense<2147483647> : vector<8xi32>
    %37 = vector.multi_reduction <minsi>, %36, %cst_17 [1] : vector<8x8xi32> to vector<8xi32>
    %38 = vector.shape_cast %37 : vector<8xi32> to vector<8x1xi32>
    %cst_18 = arith.constant 0x4B18967F : f32
    %39 = vector.broadcast %cst_18 : f32 to vector<8x8xf32>
    %40 = arith.select %28, %15, %39 : vector<8x8xi1>, vector<8x8xf32>
    %cst_19 = arith.constant dense<0x7F800000> : vector<8xf32>
    %41 = vector.multi_reduction <minimumf>, %40, %cst_19 [1] : vector<8x8xf32> to vector<8xf32>
    %42 = vector.shape_cast %41 : vector<8xf32> to vector<8x1xf32>
    %43 = vector.broadcast %42 : vector<8x1xf32> to vector<8x8xf32>
    %44 = arith.cmpf oeq, %40, %43 : vector<8x8xf32>
    %c8_i32_20 = arith.constant 8 : i32
    %45 = vector.broadcast %c8_i32_20 : i32 to vector<8x8xi32>
    %46 = arith.select %44, %24, %45 : vector<8x8xi1>, vector<8x8xi32>
    %cst_21 = arith.constant dense<2147483647> : vector<8xi32>
    %47 = vector.multi_reduction <minsi>, %46, %cst_21 [1] : vector<8x8xi32> to vector<8xi32>
    %48 = vector.shape_cast %47 : vector<8xi32> to vector<8x1xi32>
    %cst_22 = arith.constant 0.000000e+00 : f32
    %49 = vector.broadcast %cst_22 : f32 to vector<8x1xf32>
    %50 = arith.maximumf %32, %49 : vector<8x1xf32>
    %51 = math.sqrt %50 : vector<8x1xf32>
    %52 = math.sqrt %42 : vector<8x1xf32>
    %c0_23 = arith.constant 0 : index
    %c0_24 = arith.constant 0 : index
    %53 = vector.load %arg2[%c0_23, %c0_24] : memref<8x32xf32, #tpu.memory_space<vmem>>, vector<8x32xf32>
    %54 = vector.broadcast %38 : vector<8x1xi32> to vector<8x8xi32>
    %55 = arith.cmpi eq, %24, %54 : vector<8x8xi32>
    %56 = arith.extui %55 : vector<8x8xi1> to vector<8x8xi32>
    %57 = arith.sitofp %56 : vector<8x8xi32> to vector<8x8xf32>
    %58 = vector.broadcast %48 : vector<8x1xi32> to vector<8x8xi32>
    %59 = arith.cmpi eq, %24, %58 : vector<8x8xi32>
    %60 = arith.extui %59 : vector<8x8xi1> to vector<8x8xi32>
    %61 = arith.sitofp %60 : vector<8x8xi32> to vector<8x8xf32>
    %cst_25 = arith.constant dense<0.000000e+00> : vector<8x32xf32>
    %62 = tpu.matmul %57, %53, %cst_25 {dimension_numbers = #tpu.dot_dimension_numbers<[1], [0], [0], [1], [0, 0, 1, 1], [], []>} : vector<8x8xf32>, vector<8x32xf32>, vector<8x32xf32> -> vector<8x32xf32>
    %cst_26 = arith.constant dense<0.000000e+00> : vector<8x32xf32>
    %63 = tpu.matmul %61, %53, %cst_26 {dimension_numbers = #tpu.dot_dimension_numbers<[1], [0], [0], [1], [0, 0, 1, 1], [], []>} : vector<8x8xf32>, vector<8x32xf32>, vector<8x32xf32> -> vector<8x32xf32>
    %64 = arith.index_cast %1 : i32 to index
    %c0_27 = arith.constant 0 : index
    %65 = vector.load %arg2[%64, %c0_27] : memref<8x32xf32, #tpu.memory_space<vmem>>, vector<8x32xf32>
    %c0_28 = arith.constant 0 : index
    %c0_29 = arith.constant 0 : index
    %66 = vector.load %arg7[%c0_28, %c0_29] : memref<8x1xf32, #tpu.memory_space<vmem>>, vector<8x1xf32>
    %67 = arith.mulf %62, %62 : vector<8x32xf32>
    %cst_30 = arith.constant dense<0.000000e+00> : vector<8xf32>
    %68 = vector.multi_reduction <add>, %67, %cst_30 [1] : vector<8x32xf32> to vector<8xf32>
    %69 = vector.shape_cast %68 : vector<8xf32> to vector<8x1xf32>
    %70 = arith.mulf %63, %63 : vector<8x32xf32>
    %cst_31 = arith.constant dense<0.000000e+00> : vector<8xf32>
    %71 = vector.multi_reduction <add>, %70, %cst_31 [1] : vector<8x32xf32> to vector<8xf32>
    %72 = vector.shape_cast %71 : vector<8xf32> to vector<8x1xf32>
    %73 = arith.mulf %65, %62 : vector<8x32xf32>
    %cst_32 = arith.constant dense<0.000000e+00> : vector<8xf32>
    %74 = vector.multi_reduction <add>, %73, %cst_32 [1] : vector<8x32xf32> to vector<8xf32>
    %75 = vector.shape_cast %74 : vector<8xf32> to vector<8x1xf32>
    %76 = arith.mulf %65, %63 : vector<8x32xf32>
    %cst_33 = arith.constant dense<0.000000e+00> : vector<8xf32>
    %77 = vector.multi_reduction <add>, %76, %cst_33 [1] : vector<8x32xf32> to vector<8xf32>
    %78 = vector.shape_cast %77 : vector<8xf32> to vector<8x1xf32>
    %79 = arith.addf %66, %69 : vector<8x1xf32>
    %cst_34 = arith.constant 2.000000e+00 : f32
    %80 = vector.broadcast %cst_34 : f32 to vector<8x1xf32>
    %81 = arith.mulf %80, %75 : vector<8x1xf32>
    %82 = arith.subf %79, %81 : vector<8x1xf32>
    %cst_35 = arith.constant 9.99999996E-13 : f32
    %83 = vector.broadcast %cst_35 : f32 to vector<8x1xf32>
    %84 = arith.maximumf %82, %83 : vector<8x1xf32>
    %85 = math.sqrt %84 : vector<8x1xf32>
    %86 = arith.addf %66, %72 : vector<8x1xf32>
    %cst_36 = arith.constant 2.000000e+00 : f32
    %87 = vector.broadcast %cst_36 : f32 to vector<8x1xf32>
    %88 = arith.mulf %87, %78 : vector<8x1xf32>
    %89 = arith.subf %86, %88 : vector<8x1xf32>
    %cst_37 = arith.constant 9.99999996E-13 : f32
    %90 = vector.broadcast %cst_37 : f32 to vector<8x1xf32>
    %91 = arith.maximumf %89, %90 : vector<8x1xf32>
    %92 = math.sqrt %91 : vector<8x1xf32>
    %93 = arith.maximumf %51, %52 : vector<8x1xf32>
    %94 = arith.subf %51, %93 : vector<8x1xf32>
    %95 = math.exp %94 : vector<8x1xf32>
    %96 = arith.subf %52, %93 : vector<8x1xf32>
    %97 = math.exp %96 : vector<8x1xf32>
    %98 = arith.addf %95, %97 : vector<8x1xf32>
    %99 = math.log %98 : vector<8x1xf32>
    %100 = arith.addf %93, %99 : vector<8x1xf32>
    %101 = arith.subf %51, %100 : vector<8x1xf32>
    %102 = arith.subf %52, %100 : vector<8x1xf32>
    %103 = arith.maximumf %85, %92 : vector<8x1xf32>
    %104 = arith.subf %85, %103 : vector<8x1xf32>
    %105 = math.exp %104 : vector<8x1xf32>
    %106 = arith.subf %92, %103 : vector<8x1xf32>
    %107 = math.exp %106 : vector<8x1xf32>
    %108 = arith.addf %105, %107 : vector<8x1xf32>
    %109 = arith.divf %105, %108 : vector<8x1xf32>
    %110 = arith.divf %107, %108 : vector<8x1xf32>
    %111 = arith.mulf %109, %101 : vector<8x1xf32>
    %112 = arith.mulf %110, %102 : vector<8x1xf32>
    %113 = arith.addf %111, %112 : vector<8x1xf32>
    %cst_38 = arith.constant 0.000000e+00 : f32
    %114 = vector.broadcast %cst_38 : f32 to vector<8x1xf32>
    %115 = arith.subf %114, %113 : vector<8x1xf32>
    %c0_39 = arith.constant 0 : index
    %c0_40 = arith.constant 0 : index
    %116 = vector.load %arg9[%c0_39, %c0_40] : memref<8x1xf32, #tpu.memory_space<vmem>>, vector<8x1xf32>
    tpu.vector_store %arg9[%c0_39, %c0_40], %115 {strides = array<i32>} : memref<8x1xf32, #tpu.memory_space<vmem>>, vector<8x1xf32>,
    return
  }
  func.func @transform_0(%arg0: i32) -> (i32, i32) {
    %c0_i32 = arith.constant 0 : i32
    %c0_i32_0 = arith.constant 0 : i32
    %c0_i32_1 = arith.constant 0 : i32
    return %c0_i32, %c0_i32_0 : i32, i32
  }
  func.func @transform_1(%arg0: i32) -> (i32, i32) {
    %c0_i32 = arith.constant 0 : i32
    %c0_i32_0 = arith.constant 0 : i32
    %c0_i32_1 = arith.constant 0 : i32
    return %c0_i32, %c0_i32_0 : i32, i32
  }
  func.func @transform_2(%arg0: i32) -> (i32, i32) {
    %c0_i32 = arith.constant 0 : i32
    %c0_i32_0 = arith.constant 0 : i32
    return %arg0, %c0_i32 : i32, i32
  }
  func.func @transform_3(%arg0: i32) -> (i32, i32) {
    %c0_i32 = arith.constant 0 : i32
    %c0_i32_0 = arith.constant 0 : i32
    %c0_i32_1 = arith.constant 0 : i32
    return %c0_i32, %c0_i32_0 : i32, i32
  }
  func.func @transform_4(%arg0: i32) -> (i32, i32) {
    %c0_i32 = arith.constant 0 : i32
    %c0_i32_0 = arith.constant 0 : i32
    return %arg0, %c0_i32 : i32, i32
  }
  func.func @transform_5(%arg0: i32) -> (i32, i32) {
    %c0_i32 = arith.constant 0 : i32
    %c0_i32_0 = arith.constant 0 : i32
    %c0_i32_1 = arith.constant 0 : i32
    return %c0_i32, %c0_i32_0 : i32, i32
  }
  func.func @transform_6(%arg0: i32) -> (i32, i32) {
    %c0_i32 = arith.constant 0 : i32
    %c0_i32_0 = arith.constant 0 : i32
    return %arg0, %c0_i32 : i32, i32
  }
  func.func @transform_7(%arg0: i32) -> (i32, i32) {
    %c0_i32 = arith.constant 0 : i32
    %c0_i32_0 = arith.constant 0 : i32
    %c0_i32_1 = arith.constant 0 : i32
    return %c0_i32, %c0_i32_0 : i32, i32
  }
  func.func @transform_8(%arg0: i32) -> (i32, i32) {
    %c0_i32 = arith.constant 0 : i32
    %c0_i32_0 = arith.constant 0 : i32
    return %arg0, %c0_i32 : i32, i32
  }
}

</mosaic_0001>

<bundles_post_ra>
// kernel: tpu_custom_call.1
= control target key start
LH: loop header
LB: loop body
LE: loop exit
PB: predicated region body
PF: predicated region fallthrough
CT: control target
= control target key end

     0   :  { %vm33_vm0 = vcmask 261120   ;;  %v340_v0 = vmov 0   ;;  %vm91_vm5 = vcmask 64512   ;;  %v83_v20 = vlaneseq  ;;  %s446_s0 = inlined_call_operand.vmem [shape: f32[8,32], index: 0, kind: input, shape index: {}]   ;;  %s447_s4 = inlined_call_operand.vmem [shape: f32[8,1], index: 4, kind: input, shape index: {}]   ;;  %s448_s5 = inlined_call_operand.vmem [shape: f32[1,8], index: 5, kind: input, shape index: {}]   ;;  %s449_s3 = inlined_call_operand.vmem [shape: s32[1,8], index: 3, kind: input, shape index: {}]   ;;  %s450_s2 = inlined_call_operand.vmem [shape: s32[8,1], index: 2, kind: input, shape index: {}]   ;;  %s451_s7 = inlined_call_operand.vmem [shape: s32[1,8], index: 7, kind: input, shape index: {}]   ;;  %s452_s1 = inlined_call_operand.vmem [shape: f32[8,32], index: 1, kind: input, shape index: {}]   ;;  %s453_s6 = inlined_call_operand.vmem [shape: f32[8,1], index: 6, kind: input, shape index: {}]   ;;  %s454_s8 = inlined_call_operand.vmem [shape: f32[8,1], index: 8, kind: output, shape index: {}]  }
   0x1   :  { %317 = vset.pattern.permute.xlu0 %v340_v0  ;;  %v32_v1 = vld [vmem:[%s446_s0] sm:$0xff]  ;;  %v341_v47 = vmov 0.0  }
   0x2   :  { %v60_v2 = vld [vmem:[%s447_s4] sm:$0xff]  ;;  %309 = vmatpush.xpose.msk.msra.mxu0 %vm33_vm0, %v32_v1  ;;  %v84_v21 = vand.u32 127, %v83_v20 }
   0x3   :  { %64 = vperm.xlu0 %317, %v60_v2   ;;  %v74_v3 = vld [vmem:[%s450_s2] sm:$0xff] }
   0x4   :  { %v81_v4 = vld [vmem:[%s451_s7] sm:$0x1] }
   0x5   :  { %310 = vmatmul.msk.f32.vlgmr.msra.gmra.mxu0 %vm33_vm0, %v32_v1  ;;  %vm82_vm1 = vcmp.gt.s32.totalorder %v81_v4, 0  ;;  %v319_v8 = vld [vmem:[%s449_s3] ss:$0 sm:$0xff] }
   0x6   :  { %v85_v6 = vsel %vm82_vm1, 1, %v340_v0  ;;  %v318_v9 = vld [vmem:[%s448_s5] ss:$0 sm:$0xff] }
   0x7   :  { %v86_v7 = vperm.slane %v85_v6, 0  ;;  %v158_v40 = vld [vmem:[%s452_s1] sm:$0xff] }
   0x8   :  { %206 = vmatpush.msra.mxu2 %v158_v40  ;;  %183 = vmatpush.msra.mxu1 %v158_v40 }
   0x9   :  { %vm87_vm2 = vcmp.eq.s32.totalorder %v86_v7, 1 }
   0xb   :  { %77 = vperm.xlu0 %317, %v74_v3  }
  0x75   :  { %v65_v5 = vpop.permute.xlu0 %64 }
  0x76   :  { %v70_v12 = vadd.f32 %v318_v9, %v65_v5 }
  0x7d   :  { %v78_v10 = vpop.permute.xlu0 %77 }
  0x7e   :  { %vm80_vm3 = vcmp.eq.s32.totalorder %v78_v10, %v319_v8  ;;  %v213_v10 = vld [vmem:[%s453_s6] sm:$0xff] }
  0x7f   :  { %vm88_vm4 = vmand %vm80_vm3, %vm87_vm2 }
  0x80   :  { %vm89_vm6 = vmxor %vm87_vm2, %vm88_vm4 }
  0x82   :  { %v57_v11 = vpop.f32.mrf.mxu0 }
  0x83   :  { %v71_v13 = vmul.f32 2.0, %v57_v11 }
  0x85   :  { %v72_v14 = vsub.f32 %v70_v12, %v71_v13 }
  0x87   :  { %v73_v15 = vmax.f32 %v72_v14, 1e-12 }
  0x89   :  { %v112_v16 = vsel %vm89_vm6, %v73_v15, 9999999.0  ;;  %v90_v17 = vsel %vm88_vm4, %v73_v15, -9999999.0 }
  0x8a   :  { %v113_v18 = vsel %vm91_vm5, %v112_v16, inf  ;;  %v92_v19 = vsel %vm91_vm5, %v90_v17, -inf }
  0x8b   :  { %114 = vmin.xlane.f32.xlu1 %v113_v18 }
  0x93   :  { %93 = vmax.xlane.f32.xlu1 %v92_v19 }
  0xfe   :  { %v409_v22 = vpop.xlane.xlu1 %114 }
  0xff   :  { %vm116_vm7 = vcmp.eq.f32.partialorder %v112_v16, %v409_v22  ;;  %vm153_vm14 = vcmp.eq.f32.partialorder %v409_v22, inf }
 0x100   :  { %v117_v23 = vsel %vm116_vm7, %v84_v21, 8 }
 0x101   :  { %v118_v24 = vsel %vm91_vm5, %v117_v23, 2147483647 }
 0x102   :  { %v120_v25 = vshra.s32 %v118_v24, 16  ;;  %v119_v32 = vand.u32 65535, %v118_v24 }
 0x104   :  { %v122_v26 = vcvt.s32.f32 %v120_v25  ;;  %v121_v34 = vcvt.s32.f32 %v119_v32 }
 0x106   :  { %v94_v27 = vpop.xlane.xlu1 %93  ;;  %123 = vmin.xlane.f32.xlu2 %v122_v26 }
 0x107   :  { %vm95_vm8 = vcmp.eq.f32.partialorder %v90_v17, %v94_v27  ;;  %v133_v0 = vmax.f32 %v94_v27, 0.0 }
 0x108   :  { %v96_v28 = vsel %vm95_vm8, %v84_v21, 8 }
 0x109   :  { %v97_v29 = vsel %vm91_vm5, %v96_v28, 2147483647  ;;  %320 = vrsqrt.f32 %v133_v0  ;;  %vm141_vm13 = vcmp.eq.f32.partialorder %v133_v0, inf  ;;  %v144_v32 = vand.u32 2147483648, %v133_v0 }
 0x10a   :  { %v99_v30 = vshra.s32 %v97_v29, 16  ;;  %v98_v36 = vand.u32 65535, %v97_v29  ;;  %322 = vrsqrt.f32 %v409_v22  ;;  %vm143_vm15 = vcmp.eq.f32.partialorder %v133_v0, 0.0 }
 0x10c   :  { %v101_v31 = vcvt.s32.f32 %v99_v30  ;;  %v100_v38 = vcvt.s32.f32 %v98_v36  ;;  %v156_v36 = vand.u32 2147483648, %v409_v22 }
 0x10e   :  { %102 = vmin.xlane.f32.xlu2 %v101_v31 }
 0x10f   :  { %v321_v1 = vpop.eup %320 }
 0x110   :  { %v323_v2 = vpop.eup %322  ;;  %v135_v3 = vmul.f32 %v321_v1, %v133_v0 }
 0x111   :  { %v147_v4 = vmul.f32 %v323_v2, %v409_v22 }
 0x112   :  { %v136_v6 = vmul.f32 %v321_v1, %v135_v3 }
 0x113   :  { %v148_v8 = vmul.f32 %v323_v2, %v147_v4 }
 0x114   :  { %v137_v9 = vmul.f32 0.5, %v136_v6 }
 0x115   :  { %v149_v11 = vmul.f32 0.5, %v148_v8 }
 0x116   :  { %v138_v15 = vsub.f32 1.5, %v137_v9 }
 0x117   :  { %v150_v20 = vsub.f32 1.5, %v149_v11 }
 0x118   :  { %v139_v24 = vmul.f32 %v321_v1, %v138_v15 }
 0x119   :  { %v151_v25 = vmul.f32 %v323_v2, %v150_v20 }
 0x11a   :  { %v140_v27 = vmul.f32 %v139_v24, %v133_v0 }
 0x11b   :  { %v152_v28 = vmul.f32 %v151_v25, %v409_v22 }
 0x11c   :  { %v142_v30 = vsel %vm141_vm13, %v133_v0, %v140_v27 }
 0x179   :  { %v124_v33 = vpop.xlane.xlu2 %123 }
 0x17a   :  { %vm125_vm9 = vcmp.eq.f32.partialorder %v122_v26, %v124_v33  ;;  %v130_v41 = vcvt.f32.s32 %v124_v33 }
 0x17b   :  { %v126_v35 = vsel %vm125_vm9, %v121_v34, inf  ;;  %v154_v34 = vsel %vm153_vm14, %v409_v22, %v152_v28  ;;  %vm303_vm9 = vcmask 7168  }
 0x17c   :  { %127 = vmin.xlane.f32.xlu0 %v126_v35  ;;  %v131_v43 = vshll.u32 %v130_v41, 16 }
 0x181   :  { %v103_v37 = vpop.xlane.xlu2 %102 }
 0x182   :  { %vm104_vm10 = vcmp.eq.f32.partialorder %v101_v31, %v103_v37  ;;  %v109_v46 = vcvt.f32.s32 %v103_v37  ;;  %v432_v37 = vsel %vm143_vm15, %v144_v32, %v142_v30 }
 0x183   :  { %v105_v39 = vsel %vm104_vm10, %v100_v38, inf }
 0x184   :  { %106 = vmin.xlane.f32.xlu1 %v105_v39  ;;  %v110_v50 = vshll.u32 %v109_v46, 16 }
 0x1ef   :  { %v128_v42 = vpop.xlane.xlu0 %127 }
 0x1f0   :  { %v129_v44 = vcvt.f32.s32 %v128_v42 }
 0x1f2   :  { %v132_v45 = vadd.s32 %v131_v43, %v129_v44 }
 0x1f4   :  { %vm162_vm11 = vcmp.eq.s32.totalorder %v84_v21, %v132_v45 }
 0x1f5   :  { %v312_v48 = vsel %vm162_vm11, 1.0, %v341_v47 }
 0x1f6   :  { %314 = vmatmul.msk.f32.vlgmr.msra.gmra.mxu2 %vm91_vm5, %v312_v48 }
 0x1f7   :  { %v107_v49 = vpop.xlane.xlu1 %106 }
 0x1f8   :  { %v108_v51 = vcvt.f32.s32 %v107_v49 }
 0x1fa   :  { %v111_v52 = vadd.s32 %v110_v50, %v108_v51 }
 0x1fc   :  { %vm159_vm12 = vcmp.eq.s32.totalorder %v84_v21, %v111_v52 }
 0x1fd   :  { %v311_v53 = vsel %vm159_vm12, 1.0, %v341_v47 }
 0x1fe   :  { %313 = vmatmul.msk.f32.vlgmr.msra.gmra.mxu1 %vm91_vm5, %v311_v53 }
 0x279   :  { %v208_v54 = vpop.f32.mrf.mxu2 }
 0x27a   :  { %v218_v55 = vmul.f32 %v208_v54, %v208_v54  ;;  %v226_v60 = vmul.f32 %v208_v54, %v158_v40 }
 0x27b   :  { %v185_v56 = vpop.f32.mrf.mxu1 }
 0x27c   :  { %v214_v57 = vmul.f32 %v185_v56, %v185_v56  ;;  %v219_v58 = vsel %vm33_vm0, %v218_v55, 0.0  ;;  %v222_v61 = vmul.f32 %v185_v56, %v158_v40  ;;  %v227_v62 = vsel %vm33_vm0, %v226_v60, 0.0 }
 0x27d   :  { %220 = vadd.xlane.f32.xlu1 %v219_v58 }
 0x27e   :  { %v215_v59 = vsel %vm33_vm0, %v214_v57, 0.0  ;;  %v223_v63 = vsel %vm33_vm0, %v222_v61, 0.0  ;;  %vm155_vm0 = vcmp.eq.f32.partialorder %v409_v22, 0.0 }
 0x27f   :  { %216 = vadd.xlane.f32.xlu2 %v215_v59  ;;  %v435_v40 = vsel %vm155_vm0, %v156_v36, %v154_v34 }
 0x280   :  { %v262_v42 = vmax.f32 %v432_v37, %v435_v40 }
 0x282   :  { %v263_v47 = vsub.f32 %v432_v37, %v262_v42  ;;  %v266_v49 = vsub.f32 %v435_v40, %v262_v42 }
 0x284   :  { %v264_v52 = vmul.f32 1.442695, %v263_v47  ;;  %v267_v55 = vmul.f32 1.442695, %v266_v49 }
 0x285   :  { %228 = vadd.xlane.f32.xlu1 %v227_v62 }
 0x287   :  { %224 = vadd.xlane.f32.xlu2 %v223_v63 }
 0x2f0   :  { %v221_v5 = vpop.xlane.xlu1 %220 }
 0x2f1   :  { %v246_v13 = vadd.f32 %v221_v5, %v213_v10 }
 0x2f2   :  { %v217_v7 = vpop.xlane.xlu2 %216 }
 0x2f3   :  { %v230_v17 = vadd.f32 %v217_v7, %v213_v10 }
 0x2f8   :  { %v229_v12 = vpop.xlane.xlu1 %228 }
 0x2f9   :  { %v247_v14 = vmul.f32 2.0, %v229_v12 }
 0x2fa   :  { %v225_v16 = vpop.xlane.xlu2 %224 }
 0x2fb   :  { %v248_v18 = vsub.f32 %v246_v13, %v247_v14  ;;  %v231_v19 = vmul.f32 2.0, %v225_v16 }
 0x2fd   :  { %v249_v21 = vmax.f32 %v248_v18, 1e-12  ;;  %v232_v23 = vsub.f32 %v230_v17, %v231_v19 }
 0x2ff   :  { %324 = vrsqrt.f32 %v249_v21  ;;  %v233_v26 = vmax.f32 %v232_v23, 1e-12  ;;  %vm257_vm1 = vcmp.eq.f32.partialorder %v249_v21, inf  ;;  %v260_v53 = vand.u32 2147483648, %v249_v21 }
 0x300   :  { %vm259_vm3 = vcmp.eq.f32.partialorder %v249_v21, 0.0 }
 0x301   :  { %326 = vrsqrt.f32 %v233_v26  ;;  %vm241_vm2 = vcmp.eq.f32.partialorder %v233_v26, inf  ;;  %v244_v54 = vand.u32 2147483648, %v233_v26  ;;  %vm243_vm4 = vcmp.eq.f32.partialorder %v233_v26, 0.0 }
 0x302   :  { %328 = vpow2.f32 %v264_v52 }
 0x303   :  { %330 = vpow2.f32 %v267_v55 }
 0x305   :  { %v325_v29 = vpop.eup %324 }
 0x306   :  { %v251_v31 = vmul.f32 %v325_v29, %v249_v21 }
 0x307   :  { %v327_v33 = vpop.eup %326 }
 0x308   :  { %v252_v35 = vmul.f32 %v325_v29, %v251_v31  ;;  %v235_v38 = vmul.f32 %v327_v33, %v233_v26  ;;  %v329_v0 = vpop.eup %328 }
 0x309   :  { %v331_v1 = vpop.eup %330 }
 0x30a   :  { %v253_v39 = vmul.f32 0.5, %v252_v35  ;;  %v236_v41 = vmul.f32 %v327_v33, %v235_v38  ;;  %v269_v2 = vadd.f32 %v331_v1, %v329_v0 }
 0x30c   :  { %v254_v43 = vsub.f32 1.5, %v253_v39  ;;  %v237_v44 = vmul.f32 0.5, %v236_v41 }
 0x30e   :  { %v255_v45 = vmul.f32 %v325_v29, %v254_v43  ;;  %v238_v46 = vsub.f32 1.5, %v237_v44 }
 0x310   :  { %v256_v48 = vmul.f32 %v255_v45, %v249_v21  ;;  %v239_v50 = vmul.f32 %v327_v33, %v238_v46 }
 0x312   :  { %v258_v51 = vsel %vm257_vm1, %v249_v21, %v256_v48  ;;  %v240_v22 = vmul.f32 %v239_v50, %v233_v26 }
 0x313   :  { %v261_v57 = vsel %vm259_vm3, %v260_v53, %v258_v51 }
 0x314   :  { %v242_v56 = vsel %vm241_vm2, %v233_v26, %v240_v22 }
 0x315   :  { %v245_v58 = vsel %vm243_vm4, %v244_v54, %v242_v56 }
 0x316   :  { %v275_v59 = vmax.f32 %v245_v58, %v261_v57 }
 0x318   :  { %v276_v60 = vsub.f32 %v245_v58, %v275_v59  ;;  %v279_v61 = vsub.f32 %v261_v57, %v275_v59 }
 0x31a   :  { %v277_v62 = vmul.f32 1.442695, %v276_v60  ;;  %v280_v63 = vmul.f32 1.442695, %v279_v61 }
 0x31c   :  { %332 = vpow2.f32 %v277_v62 }
 0x31d   :  { %334 = vpow2.f32 %v280_v63 }
 0x31e   :  { %336 = vlog2.f32 %v269_v2 }
 0x322   :  { %v333_v3 = vpop.eup %332 }
 0x323   :  { %v335_v4 = vpop.eup %334 }
 0x324   :  { %v282_v5 = vadd.f32 %v335_v4, %v333_v3  ;;  %v337_v6 = vpop.eup %336 }
 0x325   :  { %v271_v9 = vmul.f32 0.6931472, %v337_v6 }
 0x326   :  { %338 = vrcp.f32 %v282_v5  ;;  %v294_v11 = vand.u32 2147483648, %v282_v5  ;;  %v292_v13 = vand.u32 2147483647, %v282_v5  ;;  %vm288_vm6 = vweird.f32 %v282_v5 }
 0x327   :  { %v272_v14 = vadd.f32 %v271_v9, %v262_v42 }
 0x328   :  { %v295_v16 = vor.u32 1.1754944e-38, %v294_v11  ;;  %vm293_vm8 = vcmp.eq.f32.partialorder %v292_v13, 8.507059e+37 }
 0x329   :  { %v273_v19 = vsub.f32 %v432_v37, %v272_v14  ;;  %v274_v20 = vsub.f32 %v435_v40, %v272_v14 }
 0x32c   :  { %v339_v7 = vpop.eup %338 }
 0x32d   :  { %v284_v8 = vmul.f32 %v339_v7, %v282_v5  ;;  %vm289_vm5 = vweird.f32 %v339_v7 }
 0x32e   :  { %vm290_vm7 = vmor %vm288_vm6, %vm289_vm5 }
 0x32f   :  { %v285_v10 = vsub.f32 1.0, %v284_v8 }
 0x331   :  { %v286_v12 = vmul.f32 %v339_v7, %v285_v10 }
 0x333   :  { %v287_v15 = vadd.f32 %v339_v7, %v286_v12 }
 0x335   :  { %v291_v17 = vsel %vm290_vm7, %v339_v7, %v287_v15 }
 0x336   :  { %v296_v18 = vsel %vm293_vm8, %v295_v16, %v291_v17 }
 0x337   :  { %v297_v21 = vmul.f32 %v333_v3, %v296_v18  ;;  %v298_v23 = vmul.f32 %v335_v4, %v296_v18 }
 0x339   :  { %v299_v24 = vmul.f32 %v297_v21, %v273_v19  ;;  %v300_v25 = vmul.f32 %v298_v23, %v274_v20 }
 0x33b   :  { %v301_v26 = vadd.f32 %v300_v25, %v299_v24 }
 0x33d   :  { %v302_v27 = vsub.f32 0.0, %v301_v26 }
 0x33f   :  { %304 = vst.msk [vmem:[%s454_s8] sm:$0xff] %vm303_vm9, %v302_v27 }

</bundles_post_ra>
